<compile_context>
chip_gen: v5e
topology: v5e:2x2
jax: 0.10.0
libtpu: 0.0.40
codegen_flags: <defaults>
</compile_context>

<pallas_src>
import functools

import jax
import jax.numpy as jnp
from jax.experimental import pallas as pl
from jax.experimental.pallas import tpu as pltpu


def _recurrent_dropout_kernel(mask_ref, x_ref, o_ref):
    """mask_ref: (1, BD) shared mask; x_ref/o_ref: (TT, BD) tile of time steps."""
    # (1, BD) broadcasts over the sublane (time) axis of the (TT, BD) tile.
    o_ref[...] = (x_ref[...] * mask_ref[...]).astype(o_ref.dtype)


def _pick_time_tile(T, row_bytes, target_bytes=2 * 1024 * 1024):
    """Pick TT (time steps per block): ~target_bytes per block, multiple of 8 or == T."""
    tt = max(1, target_bytes // max(1, row_bytes))
    if tt >= T:
        return T
    tt = max(8, (tt // 8) * 8)  # keep sublane dim a multiple of 8
    return min(tt, T)           # if T < 8 this collapses to the full dim


def recurrent_dropout(x, p=0.5, *, training=True, key=None, seed=0):
    """Pallas equivalent of RecurrentDropout.forward(x, p).

    x: (time, samples, input_dim). Returns mask * x where the Bernoulli(1-p)/(1-p)
    mask has shape (1, samples, input_dim) and is reused for every time step.
    Identity if p == 0 or not training; zeros if p >= 1.
    """
    if (not p) or (not training):
        return x
    p = float(p)
    if p >= 1.0:
        return jnp.zeros_like(x)

    T, B, D = x.shape
    BD = B * D
    keep_prob = 1.0 - p

    if key is None:
        key = jax.random.PRNGKey(seed)

    # Shared (time-invariant) dropout mask, built once on host/XLA side, in x.dtype.
    mask = (
        jax.random.bernoulli(key, keep_prob, (1, BD)).astype(x.dtype)
        * jnp.asarray(1.0 / keep_prob, dtype=x.dtype)
    )

    x2d = x.reshape(T, BD)  # lane-dense layout: minor dim = B*D
    itemsize = jnp.dtype(x.dtype).itemsize
    TT = _pick_time_tile(T, BD * itemsize)
    grid = (pl.cdiv(T, TT),)

    cost = pl.CostEstimate(
        flops=T * BD,
        transcendentals=0,
        bytes_accessed=2 * T * BD * itemsize + BD * itemsize,
    )

    out2d = pl.pallas_call(
        _recurrent_dropout_kernel,
        out_shape=jax.ShapeDtypeStruct((T, BD), x.dtype),
        grid=grid,
        in_specs=[
            pl.BlockSpec((1, BD), lambda t: (0, 0)),    # mask: same block every step
            pl.BlockSpec((TT, BD), lambda t: (t, 0)),   # x: TT time steps per block
        ],
        out_specs=pl.BlockSpec((TT, BD), lambda t: (t, 0)),
        compiler_params=pltpu.CompilerParams(
            # No cross-iteration state -> shard the time axis across TensorCores (v7x).
            dimension_semantics=("parallel",),
        ),
        cost_estimate=cost,
    )(mask, x2d)

    return out2d.reshape(T, B, D)


if __name__ == "__main__":
    # Small shapes consistent with (time, samples, input_dim).
    T, B, D = 8, 8, 128
    root = jax.random.PRNGKey(0)
    k_x, k_mask = jax.random.split(root)
    x = jax.random.normal(k_x, (T, B, D), dtype=jnp.float32)

    p = 0.5
    y = recurrent_dropout(x, p=p, training=True, key=k_mask)
    y = jax.block_until_ready(y)

    # Reference: identical mask construction applied with plain jnp broadcasting.
    keep_prob = 1.0 - p
    ref_mask = (
        jax.random.bernoulli(k_mask, keep_prob, (1, B * D)).astype(x.dtype)
        / jnp.asarray(keep_prob, dtype=x.dtype)
    ).reshape(1, B, D)
    y_ref = x * ref_mask
    assert bool(jnp.allclose(y, y_ref, atol=1e-6)), "kernel output != reference mask*x"

    # Semantics checks:
    ratio = jnp.where(x != 0, y / x, 0.0)
    same_mask_over_time = bool(jnp.all(jnp.abs(ratio - ratio[0:1]) < 1e-5))
    vals_ok = bool(
        jnp.all((jnp.abs(ratio) < 1e-5) | (jnp.abs(ratio - 1.0 / keep_prob) < 1e-4))
    )
    identity_ok = bool(jnp.all(recurrent_dropout(x, p=0.0) == x)) and bool(
        jnp.all(recurrent_dropout(x, p=p, training=False) == x)
    )
    zeros_ok = bool(jnp.all(recurrent_dropout(x, p=1.0, key=k_mask) == 0))

    assert same_mask_over_time, "mask differs across time steps"
    assert vals_ok, "mask values are not in {0, 1/(1-p)}"
    assert identity_ok, "identity path broken"
    assert zeros_ok, "p>=1 path should produce zeros"

    print("KERNEL_OK")
</pallas_src>

<mosaic_0001>
module attributes {stable_mosaic.version = 11 : i64} {
  func.func @_recurrent_dropout_kernel(%arg0: i32, %arg1: memref<1x1024xf32, #tpu.memory_space<vmem>>, %arg2: memref<8x1024xf32, #tpu.memory_space<vmem>>, %arg3: memref<8x1024xf32, #tpu.memory_space<vmem>>) attributes {dimension_semantics = [#tpu.dimension_semantics<parallel>], iteration_bounds = array<i64: 1>, scalar_prefetch = 0 : i64, scratch_operands = 0 : i64, tpu.core_type = #tpu.core_type<tc>, window_params = [{pipeline_mode = #tpu.pipeline_mode<synchronous>, transform_indices = @transform_0, window_bounds = array<i64: 1, 1024>}, {transform_indices = @transform_1, window_bounds = array<i64: 8, 1024>}, {transform_indices = @transform_2, window_bounds = array<i64: 8, 1024>}]} {
    %c0 = arith.constant 0 : index
    %c0_0 = arith.constant 0 : index
    %0 = vector.load %arg2[%c0, %c0_0] : memref<8x1024xf32, #tpu.memory_space<vmem>>, vector<8x1024xf32>
    %c0_1 = arith.constant 0 : index
    %c0_2 = arith.constant 0 : index
    %1 = vector.load %arg1[%c0_1, %c0_2] : memref<1x1024xf32, #tpu.memory_space<vmem>>, vector<1x1024xf32>
    %2 = vector.broadcast %1 : vector<1x1024xf32> to vector<8x1024xf32>
    %3 = arith.mulf %0, %2 : vector<8x1024xf32>
    %c0_3 = arith.constant 0 : index
    %c0_4 = arith.constant 0 : index
    %4 = vector.load %arg3[%c0_3, %c0_4] : memref<8x1024xf32, #tpu.memory_space<vmem>>, vector<8x1024xf32>
    tpu.vector_store %arg3[%c0_3, %c0_4], %3 {strides = array<i32>} : memref<8x1024xf32, #tpu.memory_space<vmem>>, vector<8x1024xf32>,
    return
  }
  func.func @transform_0(%arg0: i32) -> (i32, i32) {
    %c0_i32 = arith.constant 0 : i32
    %c0_i32_0 = arith.constant 0 : i32
    %c0_i32_1 = arith.constant 0 : i32
    return %c0_i32, %c0_i32_0 : i32, i32
  }
  func.func @transform_1(%arg0: i32) -> (i32, i32) {
    %c0_i32 = arith.constant 0 : i32
    %c0_i32_0 = arith.constant 0 : i32
    return %arg0, %c0_i32 : i32, i32
  }
  func.func @transform_2(%arg0: i32) -> (i32, i32) {
    %c0_i32 = arith.constant 0 : i32
    %c0_i32_0 = arith.constant 0 : i32
    return %arg0, %c0_i32 : i32, i32
  }
}

</mosaic_0001>

<bundles_post_ra>
// kernel: tpu_custom_call.1
= control target key start
LH: loop header
LB: loop body
LE: loop exit
PB: predicated region body
PF: predicated region fallthrough
CT: control target
= control target key end

     0   :  { %7 = vsyncpa [#allocation3], 0  ;;  %s208_s0 = inlined_call_operand.hbm [shape: f32[1,1024], index: 0, kind: input, shape index: {}]   ;;  %s209_s1 = inlined_call_operand.hbm [shape: f32[8,1024], index: 1, kind: input, shape index: {}]   ;;  %s210_s2 = inlined_call_operand.hbm [shape: f32[8,1024], index: 2, kind: output, shape index: {}]  }
   0x1   :  { %8 = vsyncpa [#allocation6], 0 }
   0x2   :  { %9 = vsyncpa [#allocation4], 0  ;;  %s15_s11 = sshll.u32 %s208_s0, 4  ;;  %s181_s12 = smov [#allocation2]   ;;  %s16_s11 = int_to_ptr.hbm [resolvable:$true] %s15_s11 }
   0x3   :  { %s17_s13 = sshll.u32 %s181_s12, 4  ;;  %s26_s16 = sshll.u32 %s209_s1, 4  ;;  %s18_s13 = int_to_ptr.vmem [resolvable:$true] %s17_s13  ;;  %s27_s16 = int_to_ptr.hbm [resolvable:$true] %s26_s16 }
   0x4   :  { %20 = dma.hbm_to_vmem [thread:$0]  %s16_s11, 128, %s18_s13, [#allocation3]  }
   0x5   :  { %s182_s17 = smov [#allocation5]  }
   0x6   :  { %s28_s18 = sshll.u32 %s182_s17, 4  ;;  %s29_s18 = int_to_ptr.vmem [resolvable:$true] %s28_s18 }
   0x7   :  { %31 = dma.hbm_to_vmem [thread:$0]  %s27_s16, 1024, %s29_s18, [#allocation6]  }
   0x8   :  { %175 = dma.done.wait [#allocation3], 128  }
   0x9   :  { %176 = vsyncadd [#allocation3], 4294967168 }
   0xa   :  { %177 = dma.done.wait [#allocation6], 1024  }
   0xb   :  { %178 = vsyncadd [#allocation6], 4294966272  ;;  %v40_v0 = vld [vmem:[#allocation5] sm:$0xff]  ;;  %v48_v1 = vld [vmem:[#allocation2] sm:$0xff]  ;;  %s183_s0 = smov [#allocation7]   ;;  %s89_s21 = sshll.u32 %s210_s2, 4  ;;  %s90_s21 = int_to_ptr.hbm [resolvable:$true] %s89_s21 }
   0xc   :  { %v41_v2 = vld [vmem:[#allocation5 + $0x8] sm:$0xff]  ;;  %v50_v3 = vperm.slane %v48_v1, 0  ;;  %v51_v4 = vperm.slane %v48_v1, 1  ;;  %v42_v5 = vld [vmem:[#allocation5 + $0x10] sm:$0xff]  ;;  %v52_v6 = vperm.slane %v48_v1, 2  ;;  %v43_v7 = vld [vmem:[#allocation5 + $0x18] sm:$0xff] }
   0xd   :  { %v53_v8 = vperm.slane %v48_v1, 3  ;;  %v44_v9 = vld [vmem:[#allocation5 + $0x20] sm:$0xff]  ;;  %v54_v10 = vperm.slane %v48_v1, 4  ;;  %v55_v11 = vperm.slane %v48_v1, 5  ;;  %v45_v15 = vld [vmem:[#allocation5 + $0x28] sm:$0xff]  ;;  %v56_v16 = vperm.slane %v48_v1, 6 }
   0xe   :  { %v66_v12 = vmul.f32 %v50_v3, %v40_v0  ;;  %v67_v13 = vmul.f32 %v51_v4, %v41_v2  ;;  %v68_v14 = vmul.f32 %v52_v6, %v42_v5  ;;  %v46_v18 = vld [vmem:[#allocation5 + $0x30] sm:$0xff]  ;;  %v57_v19 = vperm.slane %v48_v1, 7  ;;  %v47_v21 = vld [vmem:[#allocation5 + $0x38] sm:$0xff]  ;;  %s87_s1 = sshll.u32 %s183_s0, 4  ;;  %s88_s1 = int_to_ptr.vmem [resolvable:$true] %s87_s1 }
   0xf   :  { %v69_v17 = vmul.f32 %v53_v8, %v43_v7  ;;  %v70_v20 = vmul.f32 %v54_v10, %v44_v9  ;;  %v71_v22 = vmul.f32 %v55_v11, %v45_v15  ;;  %v72_v23 = vmul.f32 %v56_v16, %v46_v18 }
  0x10   :  { %74 = vst [vmem:[#allocation7] sm:$0xff] %v66_v12  ;;  %v73_v24 = vmul.f32 %v57_v19, %v47_v21 }
  0x11   :  { %75 = vst [vmem:[#allocation7 + $0x8] sm:$0xff] %v67_v13 }
  0x12   :  { %76 = vst [vmem:[#allocation7 + $0x10] sm:$0xff] %v68_v14 }
  0x13   :  { %77 = vst [vmem:[#allocation7 + $0x18] sm:$0xff] %v69_v17 }
  0x14   :  { %78 = vst [vmem:[#allocation7 + $0x20] sm:$0xff] %v70_v20 }
  0x15   :  { %79 = vst [vmem:[#allocation7 + $0x28] sm:$0xff] %v71_v22 }
  0x16   :  { %80 = vst [vmem:[#allocation7 + $0x30] sm:$0xff] %v72_v23 }
  0x17   :  { %81 = vst [vmem:[#allocation7 + $0x38] sm:$0xff] %v73_v24 }
  0x18   :  { %92 = dma.vmem_to_hbm [thread:$0]  %s88_s1, 1024, %s90_s21, [#allocation4]  }
  0x19   :  { %179 = dma.done.wait [#allocation4], 1024  }
  0x1a   :  { %180 = vsyncadd [#allocation4], 4294966272 }
  0x1b   :  { %97 = vsyncpa [#allocation3], 1 }
  0x1c   :  { %98 = vsyncpa [#allocation6], 1 }
  0x1d   :  { %99 = vsyncpa [#allocation4], 1 }

</bundles_post_ra>
